<compile_context>
chip_gen: v7x
topology: tpu7x:2x2x1
jax: 0.10.0
libtpu: 0.0.40
codegen_flags: <defaults>
</compile_context>

<pallas_src>
import jax
import jax.numpy as jnp
from jax.experimental import pallas as pl
from jax.experimental.pallas import tpu as pltpu


def autoencoder_kernel(x_ref, gates_ref, w1_ref, wzp_ref, bias_ref, out_ref):
    B, D = x_ref.shape            # static
    H = w1_ref.shape[1]           # padded hidden
    L2 = wzp_ref.shape[1]         # 2 * latent

    x = x_ref[...]                # (B, D)
    gates = gates_ref[...]        # (2, D): [gate1; gate2]

    # Both gated branches row-stacked via broadcast (layout no-op, no concat copy).
    xg = (gates[:, None, :] * x[None, :, :]).reshape(2 * B, D)        # (2B, D)

    # Encoder Linear1 (+ folded BatchNorm1d) + ReLU  (dropout = identity in eval).
    h = jnp.dot(xg, w1_ref[...], preferred_element_type=jnp.float32) + bias_ref[0:1, :H]
    h = jnp.maximum(h, 0.0)                                           # (2B, H)

    # Encoder Linear2 (+ folded batch_norm2) and predictor Linear fused into ONE
    # matmul: output columns [0:L) = z, [L:2L) = p.  Written straight to out_ref.
    out_ref[...] = (
        jnp.dot(h, wzp_ref[...], preferred_element_type=jnp.float32)
        + bias_ref[1:2, :L2]
    )


@jax.jit
def autoencoder_forward(x, packed):
    """Run the kernel; returns (p1, p2, z1, z2)."""
    B = x.shape[0]
    L = packed["wzp"].shape[1] // 2
    vmem = pl.BlockSpec(memory_space=pltpu.MemorySpace.VMEM)

    inputs = (
        x,                  # (B, D)
        packed["gates"],    # (2, D)      precomputed hard-sigmoid gates
        packed["w1p"],      # (D, Hpad)   BN1-folded, hidden zero-padded
        packed["wzp"],      # (Hpad, 2L)  [w2' | w2' @ wp], BN2-folded
        packed["bias"],     # (2, Hpad)   row0 = b1', row1 = [bzp | 0...]
    )

    out = pl.pallas_call(
        autoencoder_kernel,
        out_shape=jax.ShapeDtypeStruct((2 * B, 2 * L), jnp.float32),
        in_specs=[vmem] * len(inputs),
        out_specs=vmem,
    )(*inputs)

    z = out[:, :L]      # rows [0:B) branch 1, [B:2B) branch 2
    p = out[:, L:]
    return p[:B], p[B:], z[:B], z[B:]


def pack_params(p):
    """Glue: fold eval-mode BN + predictor into the linears, coalesce small vectors."""
    f32 = jnp.float32
    D, H = p["w1_t"].shape
    L = p["w2_t"].shape[1]

    # Fold eval-mode BatchNorm1d into the adjacent linears.
    w1p = p["w1_t"] * p["bn1_scale"]                           # (D, H)
    b1p = p["b1"] * p["bn1_scale"] + p["bn1_shift"]            # (1, H)
    w2p = p["w2_t"] * p["bn2_scale"]                           # (H, L)
    b2p = p["b2"] * p["bn2_scale"] + p["bn2_shift"]            # (1, L)

    # Fold the predictor Linear into the second encoder linear:
    #   z = h @ w2' + b2' ;  p = z @ wp + bp = h @ (w2' @ wp) + (b2' @ wp + bp)
    wzp = jnp.concatenate([w2p, w2p @ p["wp_t"]], axis=1)                 # (H, 2L)
    bzp = jnp.concatenate([b2p, b2p @ p["wp_t"] + p["bp"]], axis=1)       # (1, 2L)

    # Precompute the hard-sigmoid gates on the host (parameter-only data).
    mu = jnp.concatenate([p["mu1"], p["mu2"]], axis=0)                    # (2, D)
    gates = jnp.clip(mu + 0.5, 0.0, 1.0)

    # Zero-pad hidden to a multiple of 128 -> full-lane vregs for h (marginal here).
    Hpad = ((H + 127) // 128) * 128
    if Hpad != H:
        w1p = jnp.pad(w1p, ((0, 0), (0, Hpad - H)))
        b1p = jnp.pad(b1p, ((0, 0), (0, Hpad - H)))
        wzp = jnp.pad(wzp, ((0, Hpad - H), (0, 0)))

    # One lane-packed bias slab: row 0 = b1' (Hpad wide), row 1 = bzp (zero-padded).
    width = max(Hpad, 2 * L)
    bias = jnp.zeros((2, width), f32)
    bias = bias.at[0, :Hpad].set(b1p[0])
    bias = bias.at[1, :2 * L].set(bzp[0])

    return {"gates": gates, "w1p": w1p, "wzp": wzp, "bias": bias}


def make_params(key, input_dim, latent_dim):
    """Deterministic synthetic parameters mirroring the PyTorch module's shapes (raw form)."""
    hidden = input_dim * 5
    ks = jax.random.split(key, 8)
    f32 = jnp.float32

    def linear_init(k, fan_in, fan_out):
        bound = 1.0 / jnp.sqrt(fan_in)
        kw, kb = jax.random.split(k)
        w = jax.random.uniform(kw, (fan_out, fan_in), f32, -bound, bound)  # PyTorch (out, in)
        b = jax.random.uniform(kb, (fan_out,), f32, -bound, bound)
        return w, b

    mu1 = 0.01 * jax.random.normal(ks[0], (input_dim,), f32)
    mu2 = 0.01 * jax.random.normal(ks[1], (input_dim,), f32)

    w1, b1 = linear_init(ks[2], input_dim, hidden)        # encoder Linear(D, 5D)
    w2, b2 = linear_init(ks[3], hidden, latent_dim)       # encoder Linear(5D, L)
    wp, bp = linear_init(ks[4], latent_dim, latent_dim)   # predictor Linear(L, L)

    eps = 1e-5
    # BatchNorm1d defaults: gamma=1, beta=0, running_mean=0, running_var=1 (eval mode).
    def bn_fold(dim):
        gamma = jnp.ones((dim,), f32)
        beta = jnp.zeros((dim,), f32)
        rmean = jnp.zeros((dim,), f32)
        rvar = jnp.ones((dim,), f32)
        scale = gamma / jnp.sqrt(rvar + eps)
        shift = beta - rmean * scale
        return scale, shift

    bn1_scale, bn1_shift = bn_fold(hidden)
    bn2_scale, bn2_shift = bn_fold(latent_dim)

    return {
        "mu1": mu1.reshape(1, input_dim),
        "mu2": mu2.reshape(1, input_dim),
        "w1_t": w1.T,  # (D, H)
        "b1": b1.reshape(1, hidden),
        "bn1_scale": bn1_scale.reshape(1, hidden),
        "bn1_shift": bn1_shift.reshape(1, hidden),
        "w2_t": w2.T,  # (H, L)
        "b2": b2.reshape(1, latent_dim),
        "bn2_scale": bn2_scale.reshape(1, latent_dim),
        "bn2_shift": bn2_shift.reshape(1, latent_dim),
        "wp_t": wp.T,  # (L, L)
        "bp": bp.reshape(1, latent_dim),
    }


def reference_forward(x, p):
    """Pure-JAX reference of the eval-mode forward, using the RAW (unfolded) params."""
    g1 = jnp.clip(p["mu1"] + 0.5, 0.0, 1.0)
    g2 = jnp.clip(p["mu2"] + 0.5, 0.0, 1.0)

    def enc(xg):
        h = xg @ p["w1_t"] + p["b1"]
        h = h * p["bn1_scale"] + p["bn1_shift"]
        h = jnp.maximum(h, 0.0)
        z = h @ p["w2_t"] + p["b2"]
        z = z * p["bn2_scale"] + p["bn2_shift"]
        return z

    z1 = enc(x * g1)
    z2 = enc(x * g2)
    p1 = z1 @ p["wp_t"] + p["bp"]
    p2 = z2 @ p["wp_t"] + p["bp"]
    return p1, p2, z1, z2


if __name__ == "__main__":
    B, INPUT_DIM, LATENT_DIM = 8, 32, 16

    key = jax.random.PRNGKey(0)
    kx, kp = jax.random.split(key)
    x = jax.random.normal(kx, (B, INPUT_DIM), jnp.float32)
    raw_params = make_params(kp, INPUT_DIM, LATENT_DIM)
    packed = pack_params(raw_params)

    outs = autoencoder_forward(x, packed)
    outs = jax.block_until_ready(outs)

    # Note: the w2'@wp pre-fold changes FP associativity; verify against the raw reference.
    refs = reference_forward(x, raw_params)
    for o, r in zip(outs, refs):
        assert o.shape == r.shape and o.dtype == jnp.float32
        assert jnp.allclose(o, r, atol=1e-4, rtol=1e-4), "mismatch vs pure-JAX reference"

    print("KERNEL_OK")
</pallas_src>

<mosaic_0001>
module attributes {stable_mosaic.version = 11 : i64} {
  func.func @autoencoder_kernel(%arg0: memref<8x32xf32, #tpu.memory_space<vmem>>, %arg1: memref<2x32xf32, #tpu.memory_space<vmem>>, %arg2: memref<32x256xf32, #tpu.memory_space<vmem>>, %arg3: memref<256x32xf32, #tpu.memory_space<vmem>>, %arg4: memref<2x256xf32, #tpu.memory_space<vmem>>, %arg5: memref<16x32xf32, #tpu.memory_space<vmem>>) attributes {dimension_semantics = [], scalar_prefetch = 0 : i64, scratch_operands = 0 : i64, tpu.core_type = #tpu.core_type<tc>} {
    %c0 = arith.constant 0 : index
    %c0_0 = arith.constant 0 : index
    %0 = vector.load %arg0[%c0, %c0_0] : memref<8x32xf32, #tpu.memory_space<vmem>>, vector<8x32xf32>
    %c0_1 = arith.constant 0 : index
    %c0_2 = arith.constant 0 : index
    %1 = vector.load %arg1[%c0_1, %c0_2] : memref<2x32xf32, #tpu.memory_space<vmem>>, vector<2x32xf32>
    %2 = vector.shape_cast %1 : vector<2x32xf32> to vector<2x1x32xf32>
    %3 = vector.shape_cast %0 : vector<8x32xf32> to vector<1x8x32xf32>
    %4 = vector.broadcast %2 : vector<2x1x32xf32> to vector<2x8x32xf32>
    %5 = vector.broadcast %3 : vector<1x8x32xf32> to vector<2x8x32xf32>
    %6 = arith.mulf %4, %5 : vector<2x8x32xf32>
    %7 = vector.shape_cast %6 : vector<2x8x32xf32> to vector<16x32xf32>
    %c0_3 = arith.constant 0 : index
    %c0_4 = arith.constant 0 : index
    %8 = vector.load %arg2[%c0_3, %c0_4] : memref<32x256xf32, #tpu.memory_space<vmem>>, vector<32x256xf32>
    %cst = arith.constant dense<0.000000e+00> : vector<16x256xf32>
    %9 = tpu.matmul %7, %8, %cst {dimension_numbers = #tpu.dot_dimension_numbers<[1], [0], [0], [1], [0, 0, 1, 1], [], []>} : vector<16x32xf32>, vector<32x256xf32>, vector<16x256xf32> -> vector<16x256xf32>
    %c0_5 = arith.constant 0 : index
    %c0_6 = arith.constant 0 : index
    %10 = vector.load %arg4[%c0_5, %c0_6] : memref<2x256xf32, #tpu.memory_space<vmem>>, vector<1x256xf32>
    %11 = vector.broadcast %10 : vector<1x256xf32> to vector<16x256xf32>
    %12 = arith.addf %9, %11 : vector<16x256xf32>
    %cst_7 = arith.constant 0.000000e+00 : f32
    %13 = vector.broadcast %cst_7 : f32 to vector<16x256xf32>
    %14 = arith.maximumf %12, %13 : vector<16x256xf32>
    %c0_8 = arith.constant 0 : index
    %c0_9 = arith.constant 0 : index
    %15 = vector.load %arg3[%c0_8, %c0_9] : memref<256x32xf32, #tpu.memory_space<vmem>>, vector<256x32xf32>
    %cst_10 = arith.constant dense<0.000000e+00> : vector<16x32xf32>
    %16 = tpu.matmul %14, %15, %cst_10 {dimension_numbers = #tpu.dot_dimension_numbers<[1], [0], [0], [1], [0, 0, 1, 1], [], []>} : vector<16x256xf32>, vector<256x32xf32>, vector<16x32xf32> -> vector<16x32xf32>
    %c1 = arith.constant 1 : index
    %c0_11 = arith.constant 0 : index
    %17 = vector.load %arg4[%c1, %c0_11] : memref<2x256xf32, #tpu.memory_space<vmem>>, vector<1x32xf32>
    %18 = vector.broadcast %17 : vector<1x32xf32> to vector<16x32xf32>
    %19 = arith.addf %16, %18 : vector<16x32xf32>
    %c0_12 = arith.constant 0 : index
    %c0_13 = arith.constant 0 : index
    %20 = vector.load %arg5[%c0_12, %c0_13] : memref<16x32xf32, #tpu.memory_space<vmem>>, vector<16x32xf32>
    tpu.vector_store %arg5[%c0_12, %c0_13], %19 {strides = array<i32>} : memref<16x32xf32, #tpu.memory_space<vmem>>, vector<16x32xf32>,
    return
  }
}

</mosaic_0001>

<bundles_post_ra>
// kernel: autoencoder_forward.1
= control target key start
LH: loop header
LB: loop body
LE: loop exit
PB: predicated region body
PF: predicated region fallthrough
CT: control target
= control target key end

     0   :  { %v34_v0 = vlaneseq  ;;  %v367_v4 = vmov 0.0   ;;  %v368_v5 = vmov 1966171168   ;;  %vm77_vm0 = vcmask 261120   ;;  %s551_s2 = inlined_call_operand.vmem [shape: f32[32,256], index: 2, kind: input, shape index: {}]   ;;  %s552_s1 = inlined_call_operand.vmem [shape: f32[2,32], index: 1, kind: input, shape index: {}]   ;;  %s553_s3 = inlined_call_operand.vmem [shape: f32[256,32], index: 3, kind: input, shape index: {}]   ;;  %s554_s0 = inlined_call_operand.vmem [shape: f32[8,32], index: 0, kind: input, shape index: {}]   ;;  %s555_s4 = inlined_call_operand.vmem [shape: f32[2,256], index: 4, kind: input, shape index: {}]   ;;  %s556_s5 = inlined_call_operand.vmem [shape: f32[16,32], index: 5, kind: output, shape index: {}]  }
   0x1   :  { %v58_v1 = vld [vmem:[%s551_s2 + $0x8] sm:$0xff]  ;;  %v60_v2 = vld [vmem:[%s551_s2 + $0x18] sm:$0xff]  ;;  %v57_v3 = vld [vmem:[%s551_s2] sm:$0xff]  ;;  %148 = vmatprep.mubr.f32.mxu0 %v367_v4  ;;  %v32_v6 = vunpack.c.l.s4 %v368_v5 }
   0x2   :  { %v325_v7 = vpack.c.bf16 %v60_v2, %v58_v1  ;;  %v59_v8 = vld [vmem:[%s551_s2 + $0x10] sm:$0xff]  ;;  %v62_v9 = vld [vmem:[%s551_s2 + $0x28] sm:$0xff]  ;;  %v64_v10 = vld [vmem:[%s551_s2 + $0x38] sm:$0xff]  ;;  %v417_v11 = vshrl.u32 %v34_v0, 7 }
   0x3   :  { %v327_v12 = vpack.c.bf16 %v59_v8, %v57_v3  ;;  %v329_v13 = vpack.c.bf16 %v64_v10, %v62_v9  ;;  %v61_v14 = vld [vmem:[%s551_s2 + $0x20] sm:$0xff]  ;;  %v63_v15 = vld [vmem:[%s551_s2 + $0x30] sm:$0xff]  ;;  %v33_v16 = vunpack.c.0.s8 %v32_v6  ;;  %v182_v23 = vld [vmem:[%s553_s3 + $0x88] sm:$0xff] }
   0x4   :  { %326 = vmatprep.subr.bf16.mxu0 %v325_v7  ;;  %v283_v17 = vld.sshfl [vmem:[%s552_s1] sm:$0x11 pattern:$0x75316420]  ;;  %v331_v19 = vpack.c.bf16 %v63_v15, %v61_v14  ;;  %v433_v21 = vsub.s32 0, %v417_v11  ;;  %v166_v25 = vld [vmem:[%s553_s3 + $0x8] sm:$0xff] }
   0x5   :  { %v181_v18 = vld [vmem:[%s553_s3 + $0x80] sm:$0xff]  ;;  %328 = vmatpush1.bf16.msra.mxu0 %v327_v12  ;;  %v36_v20 = vsub.s32 %v33_v16, %v417_v11  ;;  %v30_v22 = vcombine.high %v283_v17, %v283_v17  ;;  %v183_v28 = vld [vmem:[%s553_s3 + $0x90] sm:$0xff]  ;;  %v184_v29 = vld [vmem:[%s553_s3 + $0x98] sm:$0xff]  ;;  %v73_v15 = vsub.s32 1, %v417_v11 }
   0x6   :  { %v165_v24 = vld [vmem:[%s553_s3] sm:$0xff]  ;;  %330 = vmatprep.subr.bf16.mxu0 %v329_v13  ;;  %v333_v26 = vpack.c.bf16 %v182_v23, %v181_v18  ;;  %v167_v30 = vld [vmem:[%s553_s3 + $0x10] sm:$0xff]  ;;  %v337_v33 = vpack.c.bf16 %v184_v29, %v183_v28  ;;  %v168_v34 = vld [vmem:[%s553_s3 + $0x18] sm:$0xff] }
   0x7   :  { %v335_v27 = vpack.c.bf16 %v166_v25, %v165_v24  ;;  %v37_v31 = vrot.slane %v283_v17, %v36_v20  ;;  %v44_v32 = vrot.slane %v30_v22, %v36_v20  ;;  %v185_v35 = vld [vmem:[%s553_s3 + $0xa0] sm:$0xff]  ;;  %v186_v36 = vld [vmem:[%s553_s3 + $0xa8] sm:$0xff]  ;;  %v339_v40 = vpack.c.bf16 %v168_v34, %v167_v30  ;;  %v187_v45 = vld [vmem:[%s553_s3 + $0xb0] sm:$0xff] }
   0x8   :  { %v20_v37 = vld [vmem:[%s554_s0] sm:$0xff]  ;;  %334 = vmatprep.subr.bf16.mxu1 %v333_v26  ;;  %v341_v41 = vpack.c.bf16 %v186_v36, %v185_v35  ;;  %v170_v43 = vld [vmem:[%s553_s3 + $0x28] sm:$0xff]  ;;  %v188_v46 = vld [vmem:[%s553_s3 + $0xb8] sm:$0xff] }
   0x9   :  { %332 = vmatpush1.bf16.msra.mxu0 %v331_v19  ;;  %v48_v38 = vrot.slane %v37_v31, %v433_v21  ;;  %v52_v39 = vrot.slane %v44_v32, %v433_v21  ;;  %336 = vmatpush3.bf16.msra.mxu1 %v335_v27  ;;  %v169_v42 = vld [vmem:[%s553_s3 + $0x20] sm:$0xff]  ;;  %v345_v49 = vpack.c.bf16 %v188_v46, %v187_v45  ;;  %v171_v50 = vld [vmem:[%s553_s3 + $0x30] sm:$0xff]  ;;  %v172_v51 = vld [vmem:[%s553_s3 + $0x38] sm:$0xff] }
   0xa   :  { %338 = vmatprep.subr.bf16.mxu1 %v337_v33  ;;  %v343_v48 = vpack.c.bf16 %v170_v43, %v169_v42  ;;  %v189_v52 = vld [vmem:[%s553_s3 + $0xc0] sm:$0xff]  ;;  %v190_v53 = vld [vmem:[%s553_s3 + $0xc8] sm:$0xff]  ;;  %v347_v54 = vpack.c.bf16 %v172_v51, %v171_v50  ;;  %v191_v58 = vld [vmem:[%s553_s3 + $0xd0] sm:$0xff] }
   0xb   :  { %v55_v44 = vmul.f32 %v48_v38, %v20_v37  ;;  %v56_v47 = vmul.f32 %v52_v39, %v20_v37  ;;  %v349_v55 = vpack.c.bf16 %v190_v53, %v189_v52  ;;  %v173_v56 = vld [vmem:[%s553_s3 + $0x40] sm:$0xff]  ;;  %v174_v57 = vld [vmem:[%s553_s3 + $0x48] sm:$0xff]  ;;  %v192_v59 = vld [vmem:[%s553_s3 + $0xd8] sm:$0xff] }
   0xc   :  { %v351_v60 = vpack.c.bf16 %v174_v57, %v173_v56  ;;  %v353_v61 = vpack.c.bf16 %v192_v59, %v191_v58  ;;  %v175_v62 = vld [vmem:[%s553_s3 + $0x50] sm:$0xff]  ;;  %v176_v63 = vld [vmem:[%s553_s3 + $0x58] sm:$0xff]  ;;  %v193_v0 = vld [vmem:[%s553_s3 + $0xe0] sm:$0xff] }
   0xd   :  { %284 = vmatmul.mubr.msk.f32.vlgmr.msra.gmra.mrb[0].mxu0 %vm77_vm0, %v55_v44  ;;  %340 = vmatpush3.bf16.msra.mxu1 %v339_v40  ;;  %v194_v1 = vld [vmem:[%s553_s3 + $0xe8] sm:$0xff]  ;;  %v355_v2 = vpack.c.bf16 %v176_v63, %v175_v62  ;;  %v195_v7 = vld [vmem:[%s553_s3 + $0xf0] sm:$0xff]  ;;  %v196_v8 = vld [vmem:[%s553_s3 + $0xf8] sm:$0xff] }
   0xe   :  { %154 = vmatprep.mubr.f32.mxu0 %v367_v4  ;;  %342 = vmatprep.subr.bf16.mxu1 %v341_v41  ;;  %v357_v3 = vpack.c.bf16 %v194_v1, %v193_v0  ;;  %v177_v4 = vld [vmem:[%s553_s3 + $0x60] sm:$0xff]  ;;  %v178_v5 = vld [vmem:[%s553_s3 + $0x68] sm:$0xff]  ;;  %v361_v9 = vpack.c.bf16 %v196_v8, %v195_v7  ;;  %v179_v10 = vld [vmem:[%s553_s3 + $0x70] sm:$0xff] }
   0xf   :  { %v359_v6 = vpack.c.bf16 %v178_v5, %v177_v4  ;;  %v180_v12 = vld [vmem:[%s553_s3 + $0x78] sm:$0xff]  ;;  %v65_v14 = vld [vmem:[%s555_s4] ss:$2 sm:$0x3] }
  0x10   :  { %v363_v13 = vpack.c.bf16 %v180_v12, %v179_v10  ;;  %v70_v16 = vrot.slane %v65_v14, %v433_v21  ;;  %v74_v17 = vrot.slane %v65_v14, %v73_v15  ;;  %v286_v21 = vld [vmem:[%s555_s4 + $0x1] ss:$0 sm:$0xff] }
  0x11   :  { %285 = vmatmul.mubr.msk.f32.gmra.mrb[2].mxu0 %vm77_vm0, %v56_v47  ;;  %344 = vmatpush3.bf16.msra.mxu1 %v343_v48 }
  0x12   :  { %346 = vmatprep.subr.bf16.mxu1 %v345_v49 }
  0x15   :  { %348 = vmatpush3.bf16.msra.mxu1 %v347_v54 }
  0x16   :  { %350 = vmatprep.subr.bf16.mxu1 %v349_v55 }
  0x19   :  { %352 = vmatpush3.bf16.msra.mxu1 %v351_v60 }
  0x1a   :  { %354 = vmatprep.subr.bf16.mxu1 %v353_v61 }
  0x1d   :  { %356 = vmatpush3.bf16.msra.mxu1 %v355_v2 }
  0x1e   :  { %358 = vmatprep.subr.bf16.mxu1 %v357_v3 }
  0x21   :  { %360 = vmatpush3.bf16.msra.mxu1 %v359_v6 }
  0x22   :  { %362 = vmatprep.subr.bf16.mxu1 %v361_v9 }
  0x25   :  { %364 = vmatpush3.bf16.msra.mxu1 %v363_v13 }
  0xe0   :  { %v150_v18 = vpop.f32.mrb[0].mxu0 }
  0xe1   :  { %v151_v19 = vadd.f32 %v150_v18, %v70_v16  ;;  %v152_v20 = vpop.f32.mrb[1].mxu0 }
  0xe2   :  { %v153_v22 = vadd.f32 %v152_v20, %v74_v17 }
  0xe3   :  { %v161_v25 = vmax.f32 %v151_v19, 0.0 }
  0xe4   :  { %v156_v23 = vpop.f32.mrb[2].mxu0  ;;  %v162_v24 = vmax.f32 %v153_v22, 0.0 }
  0xe5   :  { %v157_v26 = vadd.f32 %v156_v23, %v70_v16  ;;  %v158_v27 = vpop.f32.mrb[3].mxu0 }
  0xe6   :  { %v159_v28 = vadd.f32 %v158_v27, %v74_v17  ;;  %266 = vmatprep.mubr.f32.mxu1 %v162_v24 }
  0xe7   :  { %267 = vmatmul.mubr.f32.vlgmr.msra.gmra.mrb[0].mxu1 %v161_v25  ;;  %v163_v30 = vmax.f32 %v157_v26, 0.0 }
  0xe8   :  { %v164_v29 = vmax.f32 %v159_v28, 0.0 }
  0xea   :  { %271 = vmatprep.mubr.f32.mxu1 %v164_v29 }
  0xeb   :  { %272 = vmatmul.mubr.f32.gmra.mrb[2].mxu1 %v163_v30 }
 0x1ba   :  { %v319_v11 = vpop.f32.mrb[0].mxu1 }
 0x1bb   :  { %v320_v31 = vpop.f32.mrb[1].mxu1 }
 0x1bc   :  { %v321_v32 = vadd.f32 %v320_v31, %v319_v11 }
 0x1be   :  { %v269_v33 = vadd.f32 %v321_v32, %v286_v21  ;;  %v322_v34 = vpop.f32.mrb[2].mxu1 }
 0x1bf   :  { %v323_v35 = vpop.f32.mrb[3].mxu1 }
 0x1c0   :  { %277 = vst.msk [vmem:[%s556_s5] sm:$0xff] %vm77_vm0, %v269_v33  ;;  %v324_v36 = vadd.f32 %v323_v35, %v322_v34 }
 0x1c2   :  { %v274_v37 = vadd.f32 %v324_v36, %v286_v21 }
 0x1c4   :  { %278 = vst.msk [vmem:[%s556_s5 + $0x8] sm:$0xff] %vm77_vm0, %v274_v37 }

</bundles_post_ra>
